<compile_context>
chip_gen: v7x
topology: tpu7x:2x2x1
jax: 0.10.0
libtpu: 0.0.40
codegen_flags: <defaults>
</compile_context>

<pallas_src>
import jax
import jax.numpy as jnp
from jax.experimental import pallas as pl
from jax.experimental.pallas import tpu as pltpu


def _round_up(x, m):
    return ((x + m - 1) // m) * m


def _mlp_g_kernel(x_ref, w1_ref, w2_ref, b1_ref, b2_ref, o_ref, acc_ref):
    # x_ref : (C, T)    input dtype (cast to bf16 below for the MXU)
    # w1_ref: (hc, C)   bf16 hidden-chunk of W1
    # w2_ref: (C, hc)   bf16 hidden-chunk of W2
    # b1_ref: (hc, 1)   f32
    # b2_ref: (C, 1)    f32
    # o_ref : (C, T)    out dtype
    # acc_ref: (C, T)   f32 accumulator over hidden chunks
    k = pl.program_id(2)

    @pl.when(k == 0)
    def _init():
        acc_ref[...] = jnp.zeros_like(acc_ref)

    # 1x1 conv #1 on this hidden chunk: (hc, C) @ (C, T) with f32 accumulation.
    x = x_ref[...].astype(w1_ref.dtype)
    h = jnp.dot(w1_ref[...], x, preferred_element_type=jnp.float32)
    h = h + b1_ref[...]

    # GELU in f32 (tanh approximation; lowers to EUP tanh).
    # TODO(synk): PyTorch nn.GELU() defaults to the exact erf form; the tanh
    # approximation differs by <~1e-3 absolute and keeps the Mosaic lowering safe.
    c = 0.7978845608028654  # sqrt(2/pi)
    h = 0.5 * h * (1.0 + jnp.tanh(c * (h + 0.044715 * h * h * h)))

    # Dropout(p=0.0) is the identity -> omitted.

    # Partial 1x1 conv #2 for this hidden chunk, accumulated in f32.
    acc_ref[...] += jnp.dot(w2_ref[...], h.astype(w2_ref.dtype),
                            preferred_element_type=jnp.float32)

    @pl.when(k == pl.num_programs(2) - 1)
    def _finalize():
        o_ref[...] = (acc_ref[...] + b2_ref[...]).astype(o_ref.dtype)


def mlp_g_forward(x_nchw, w1_oihw, b1, w2_oihw, b2, *,
                  block_hw=1024, block_h=512,
                  compute_dtype=jnp.bfloat16, out_dtype=None,
                  vmem_limit_bytes=32 * 1024 * 1024):
    """Equivalent of MLP_G.forward, native NCHW layout.

    x_nchw : (N, dim, H, W)
    w1_oihw: (hidden, dim, 1, 1), b1: (hidden,)
    w2_oihw: (dim, hidden, 1, 1), b2: (dim,)
    """
    N, C, H, W = x_nchw.shape
    Hdim = w1_oihw.shape[0]
    assert w1_oihw.shape == (Hdim, C, 1, 1)
    assert w2_oihw.shape == (C, Hdim, 1, 1)
    assert b1.shape == (Hdim,) and b2.shape == (C,)

    if out_dtype is None:
        out_dtype = x_nchw.dtype   # dtype-preserving, like the PyTorch module

    HW = H * W
    # Pixel tile (lane dim): lane-dense multiple of 128, large enough to beat the
    # ~0.35us per-grid-step overhead, small enough to keep several grid steps.
    THW = _round_up(min(block_hw, _round_up(HW, 128)), 128)
    HWp = _round_up(HW, THW)

    # Hidden-chunk size (grid reduction axis). If the whole hidden dim fits the
    # chunk budget there is exactly one chunk and no weight padding at all.
    if Hdim <= block_h:
        hc, Hp = Hdim, Hdim
    else:
        hc = _round_up(block_h, 128)
        Hp = _round_up(Hdim, hc)

    # ---- free reshape (contiguous) to (N, C, HW); pad HW only if needed ----
    x3d = x_nchw.reshape(N, C, HW)
    if HWp != HW:
        # Explicit zero pad (never read garbage into the matmul lanes).
        x3d = jnp.pad(x3d, ((0, 0), (0, 0), (0, HWp - HW)))

    # Weights: (O, I, 1, 1) -> 2D, bf16 for the MXU; biases f32, column vectors.
    w1m = w1_oihw[:, :, 0, 0].astype(compute_dtype)            # (Hdim, C)
    w2m = w2_oihw[:, :, 0, 0].astype(compute_dtype)            # (C, Hdim)
    b1c = b1.reshape(Hdim, 1).astype(jnp.float32)              # (Hdim, 1)
    b2c = b2.reshape(C, 1).astype(jnp.float32)                 # (C, 1)
    if Hp != Hdim:
        # Zero-padded hidden rows/cols are mathematically inert
        # (gelu(0) = 0, zero W2 columns contribute nothing).
        w1m = jnp.pad(w1m, ((0, Hp - Hdim), (0, 0)))
        w2m = jnp.pad(w2m, ((0, 0), (0, Hp - Hdim)))
        b1c = jnp.pad(b1c, ((0, Hp - Hdim), (0, 0)))

    grid = (N, HWp // THW, Hp // hc)

    out3d = pl.pallas_call(
        _mlp_g_kernel,
        out_shape=jax.ShapeDtypeStruct((N, C, HWp), out_dtype),
        grid=grid,
        in_specs=[
            pl.BlockSpec((None, C, THW), lambda n, j, k: (n, 0, j)),  # x tile
            pl.BlockSpec((hc, C), lambda n, j, k: (k, 0)),            # W1 chunk
            pl.BlockSpec((C, hc), lambda n, j, k: (0, k)),            # W2 chunk
            pl.BlockSpec((hc, 1), lambda n, j, k: (k, 0)),            # b1 chunk
            pl.BlockSpec((C, 1), lambda n, j, k: (0, 0)),             # b2
        ],
        out_specs=pl.BlockSpec((None, C, THW), lambda n, j, k: (n, 0, j)),
        scratch_shapes=[pltpu.VMEM((C, THW), jnp.float32)],           # acc
        compiler_params=pltpu.CompilerParams(
            dimension_semantics=("parallel", "parallel", "arbitrary"),
            vmem_limit_bytes=vmem_limit_bytes),
    )(x3d, w1m, w2m, b1c, b2c)

    if HWp != HW:
        out3d = out3d[:, :, :HW]
    return out3d.reshape(N, C, H, W)   # free reshape back to NCHW


def mlp_g_reference(x_nchw, w1_oihw, b1, w2_oihw, b2):
    """Plain-JAX f32 reference (exact-erf GELU, matching torch nn.GELU())."""
    dn = ("NCHW", "OIHW", "NCHW")
    y = jax.lax.conv_general_dilated(
        x_nchw, w1_oihw, window_strides=(1, 1), padding="VALID",
        dimension_numbers=dn) + b1.reshape(1, -1, 1, 1)
    y = jax.nn.gelu(y, approximate=False)
    y = jax.lax.conv_general_dilated(
        y, w2_oihw, window_strides=(1, 1), padding="VALID",
        dimension_numbers=dn) + b2.reshape(1, -1, 1, 1)
    return y


if __name__ == "__main__":
    # Small shapes consistent with MLP_G(dim=4): hidden_dim = dim * 4 = 16.
    N, dim, H, W = 2, 4, 16, 16
    hidden = dim * 4

    key = jax.random.PRNGKey(0)
    kx, k1, kb1, k2, kb2 = jax.random.split(key, 5)
    x = jax.random.normal(kx, (N, dim, H, W), dtype=jnp.float32)
    w1 = 0.1 * jax.random.normal(k1, (hidden, dim, 1, 1), dtype=jnp.float32)
    b1 = 0.1 * jax.random.normal(kb1, (hidden,), dtype=jnp.float32)
    w2 = 0.1 * jax.random.normal(k2, (dim, hidden, 1, 1), dtype=jnp.float32)
    b2 = 0.1 * jax.random.normal(kb2, (dim,), dtype=jnp.float32)

    out = mlp_g_forward(x, w1, b1, w2, b2)
    out = jax.block_until_ready(out)

    ref = mlp_g_reference(x, w1, b1, w2, b2)
    assert out.shape == (N, dim, H, W)
    assert out.dtype == x.dtype
    # bf16 MXU inputs + tanh-GELU vs f32/erf reference -> loose but tight-enough tol.
    assert jnp.allclose(out, ref, rtol=1e-2, atol=1e-2), "mismatch vs reference"

    print("KERNEL_OK")
</pallas_src>

<mosaic_0001>
module attributes {stable_mosaic.version = 11 : i64} {
  func.func @_mlp_g_kernel(%arg0: i32, %arg1: i32, %arg2: i32, %arg3: memref<1x4x256xf32, #tpu.memory_space<vmem>>, %arg4: memref<16x4xbf16, #tpu.memory_space<vmem>>, %arg5: memref<4x16xbf16, #tpu.memory_space<vmem>>, %arg6: memref<16x1xf32, #tpu.memory_space<vmem>>, %arg7: memref<4x1xf32, #tpu.memory_space<vmem>>, %arg8: memref<1x4x256xf32, #tpu.memory_space<vmem>>, %arg9: memref<4x256xf32, #tpu.memory_space<vmem>>) attributes {dimension_semantics = [#tpu.dimension_semantics<parallel>, #tpu.dimension_semantics<parallel>, #tpu.dimension_semantics<arbitrary>], iteration_bounds = array<i64: 2, 1, 1>, scalar_prefetch = 0 : i64, scratch_operands = 1 : i64, tpu.core_type = #tpu.core_type<tc>, window_params = [{transform_indices = @transform_0, window_bounds = array<i64: 1, 4, 256>}, {transform_indices = @transform_1, window_bounds = array<i64: 16, 4>}, {transform_indices = @transform_2, window_bounds = array<i64: 4, 16>}, {transform_indices = @transform_3, window_bounds = array<i64: 16, 1>}, {pipeline_mode = #tpu.pipeline_mode<synchronous>, transform_indices = @transform_4, window_bounds = array<i64: 4, 1>}, {transform_indices = @transform_5, window_bounds = array<i64: 1, 4, 256>}]} {
    %c0_i32 = arith.constant 0 : i32
    %0 = arith.cmpi eq, %arg2, %c0_i32 : i32
    %1 = arith.extui %0 : i1 to i32
    %c0_i32_0 = arith.constant 0 : i32
    %2 = arith.cmpi ne, %1, %c0_i32_0 : i32
    scf.if %2 {
      %cst_20 = arith.constant 0.000000e+00 : f32
      %33 = vector.broadcast %cst_20 : f32 to vector<4x256xf32>
      %c0_21 = arith.constant 0 : index
      %c0_22 = arith.constant 0 : index
      %34 = vector.load %arg9[%c0_21, %c0_22] : memref<4x256xf32, #tpu.memory_space<vmem>>, vector<4x256xf32>
      tpu.vector_store %arg9[%c0_21, %c0_22], %33 {strides = array<i32>} : memref<4x256xf32, #tpu.memory_space<vmem>>, vector<4x256xf32>,
    } else {
    }
    %c0 = arith.constant 0 : index
    %c0_1 = arith.constant 0 : index
    %c0_2 = arith.constant 0 : index
    %3 = vector.load %arg3[%c0, %c0_1, %c0_2] : memref<1x4x256xf32, #tpu.memory_space<vmem>>, vector<1x4x256xf32>
    %4 = vector.shape_cast %3 : vector<1x4x256xf32> to vector<4x256xf32>
    %5 = arith.truncf %4 : vector<4x256xf32> to vector<4x256xbf16>
    %c0_3 = arith.constant 0 : index
    %c0_4 = arith.constant 0 : index
    %6 = vector.load %arg4[%c0_3, %c0_4] : memref<16x4xbf16, #tpu.memory_space<vmem>>, vector<16x4xbf16>
    %cst = arith.constant dense<0.000000e+00> : vector<16x256xf32>
    %7 = tpu.matmul %6, %5, %cst {dimension_numbers = #tpu.dot_dimension_numbers<[1], [0], [0], [1], [0, 0, 1, 1], [], []>} : vector<16x4xbf16>, vector<4x256xbf16>, vector<16x256xf32> -> vector<16x256xf32>
    %c0_5 = arith.constant 0 : index
    %c0_6 = arith.constant 0 : index
    %8 = vector.load %arg6[%c0_5, %c0_6] : memref<16x1xf32, #tpu.memory_space<vmem>>, vector<16x1xf32>
    %9 = vector.broadcast %8 : vector<16x1xf32> to vector<16x256xf32>
    %10 = arith.addf %7, %9 : vector<16x256xf32>
    %cst_7 = arith.constant 5.000000e-01 : f32
    %11 = vector.broadcast %cst_7 : f32 to vector<16x256xf32>
    %12 = arith.mulf %11, %10 : vector<16x256xf32>
    %cst_8 = arith.constant 4.471500e-02 : f32
    %13 = vector.broadcast %cst_8 : f32 to vector<16x256xf32>
    %14 = arith.mulf %13, %10 : vector<16x256xf32>
    %15 = arith.mulf %14, %10 : vector<16x256xf32>
    %16 = arith.mulf %15, %10 : vector<16x256xf32>
    %17 = arith.addf %10, %16 : vector<16x256xf32>
    %cst_9 = arith.constant 0.797884583 : f32
    %18 = vector.broadcast %cst_9 : f32 to vector<16x256xf32>
    %19 = arith.mulf %18, %17 : vector<16x256xf32>
    %20 = math.tanh %19 : vector<16x256xf32>
    %cst_10 = arith.constant 1.000000e+00 : f32
    %21 = vector.broadcast %cst_10 : f32 to vector<16x256xf32>
    %22 = arith.addf %21, %20 : vector<16x256xf32>
    %23 = arith.mulf %12, %22 : vector<16x256xf32>
    %c0_11 = arith.constant 0 : index
    %c0_12 = arith.constant 0 : index
    %24 = vector.load %arg9[%c0_11, %c0_12] : memref<4x256xf32, #tpu.memory_space<vmem>>, vector<4x256xf32>
    %c0_13 = arith.constant 0 : index
    %c0_14 = arith.constant 0 : index
    %25 = vector.load %arg5[%c0_13, %c0_14] : memref<4x16xbf16, #tpu.memory_space<vmem>>, vector<4x16xbf16>
    %26 = arith.truncf %23 : vector<16x256xf32> to vector<16x256xbf16>
    %cst_15 = arith.constant dense<0.000000e+00> : vector<4x256xf32>
    %27 = tpu.matmul %25, %26, %cst_15 {dimension_numbers = #tpu.dot_dimension_numbers<[1], [0], [0], [1], [0, 0, 1, 1], [], []>} : vector<4x16xbf16>, vector<16x256xbf16>, vector<4x256xf32> -> vector<4x256xf32>
    %28 = arith.addf %24, %27 : vector<4x256xf32>
    %c0_16 = arith.constant 0 : index
    %c0_17 = arith.constant 0 : index
    %29 = vector.load %arg9[%c0_16, %c0_17] : memref<4x256xf32, #tpu.memory_space<vmem>>, vector<4x256xf32>
    tpu.vector_store %arg9[%c0_16, %c0_17], %28 {strides = array<i32>} : memref<4x256xf32, #tpu.memory_space<vmem>>, vector<4x256xf32>,
    %c0_i32_18 = arith.constant 0 : i32
    %30 = arith.cmpi eq, %arg2, %c0_i32_18 : i32
    %31 = arith.extui %30 : i1 to i32
    %c0_i32_19 = arith.constant 0 : i32
    %32 = arith.cmpi ne, %31, %c0_i32_19 : i32
    scf.if %32 {
      %c0_20 = arith.constant 0 : index
      %c0_21 = arith.constant 0 : index
      %33 = vector.load %arg9[%c0_20, %c0_21] : memref<4x256xf32, #tpu.memory_space<vmem>>, vector<4x256xf32>
      %c0_22 = arith.constant 0 : index
      %c0_23 = arith.constant 0 : index
      %34 = vector.load %arg7[%c0_22, %c0_23] : memref<4x1xf32, #tpu.memory_space<vmem>>, vector<4x1xf32>
      %35 = vector.broadcast %34 : vector<4x1xf32> to vector<4x256xf32>
      %36 = arith.addf %33, %35 : vector<4x256xf32>
      %c0_24 = arith.constant 0 : index
      %c0_25 = arith.constant 0 : index
      %c0_26 = arith.constant 0 : index
      %37 = vector.load %arg8[%c0_24, %c0_25, %c0_26] : memref<1x4x256xf32, #tpu.memory_space<vmem>>, vector<1x4x256xf32>
      %38 = vector.shape_cast %37 : vector<1x4x256xf32> to vector<4x256xf32>
      %39 = vector.shape_cast %36 : vector<4x256xf32> to vector<1x4x256xf32>
      tpu.vector_store %arg8[%c0_24, %c0_25, %c0_26], %39 {strides = array<i32>} : memref<1x4x256xf32, #tpu.memory_space<vmem>>, vector<1x4x256xf32>,
    } else {
    }
    return
  }
  func.func @transform_0(%arg0: i32, %arg1: i32, %arg2: i32) -> (i32, i32, i32) {
    %c0_i32 = arith.constant 0 : i32
    %c0_i32_0 = arith.constant 0 : i32
    return %arg0, %c0_i32, %arg1 : i32, i32, i32
  }
  func.func @transform_1(%arg0: i32, %arg1: i32, %arg2: i32) -> (i32, i32) {
    %c0_i32 = arith.constant 0 : i32
    %c0_i32_0 = arith.constant 0 : i32
    return %arg2, %c0_i32 : i32, i32
  }
  func.func @transform_2(%arg0: i32, %arg1: i32, %arg2: i32) -> (i32, i32) {
    %c0_i32 = arith.constant 0 : i32
    %c0_i32_0 = arith.constant 0 : i32
    return %c0_i32, %arg2 : i32, i32
  }
  func.func @transform_3(%arg0: i32, %arg1: i32, %arg2: i32) -> (i32, i32) {
    %c0_i32 = arith.constant 0 : i32
    %c0_i32_0 = arith.constant 0 : i32
    return %arg2, %c0_i32 : i32, i32
  }
  func.func @transform_4(%arg0: i32, %arg1: i32, %arg2: i32) -> (i32, i32) {
    %c0_i32 = arith.constant 0 : i32
    %c0_i32_0 = arith.constant 0 : i32
    %c0_i32_1 = arith.constant 0 : i32
    return %c0_i32, %c0_i32_0 : i32, i32
  }
  func.func @transform_5(%arg0: i32, %arg1: i32, %arg2: i32) -> (i32, i32, i32) {
    %c0_i32 = arith.constant 0 : i32
    %c0_i32_0 = arith.constant 0 : i32
    return %arg0, %c0_i32, %arg1 : i32, i32, i32
  }
}

</mosaic_0001>

<bundles_post_ra>
// kernel: tpu_custom_call.1
= control target key start
LH: loop header
LB: loop body
LE: loop exit
PB: predicated region body
PF: predicated region fallthrough
CT: control target
= control target key end

     0   :  { %10 = vsyncpa [#allocation4], 0  ;;  %s989_s0 = inlined_call_operand.vmem [shape: f32[2,4,256], index: 0, kind: input, shape index: {}]   ;;  %s990_s1 = inlined_call_operand.vmem [shape: bf16[16,4], index: 1, kind: input, shape index: {}]   ;;  %s991_s2 = inlined_call_operand.vmem [shape: bf16[4,16], index: 2, kind: input, shape index: {}]   ;;  %s992_s3 = inlined_call_operand.vmem [shape: f32[16,1], index: 3, kind: input, shape index: {}]   ;;  %s993_s4 = inlined_call_operand.vmem [shape: f32[4,1], index: 4, kind: input, shape index: {}]   ;;  %s994_s5 = inlined_call_operand.hbm [shape: f32[2,4,256], index: 5, kind: output, shape index: {}]  }
   0x1   :  { %12 = vsyncpa [#allocation4 + $0x1], 0  ;;  %s862_s18 = smov 0   ;;  %s864_s19 = smov 0  }
   0x2   :  { %s866_s20 = smov 0   ;;  %s868_s21 = smov 0  }
   0x3   :  { %s870_s22 = smov 0   ;;  %s872_s23 = smov 0  }
   0x4 LB: > { %s658_s24 = sadd.s32 4294967295, %s827_s23   ;;  %s659_s25 = sadd.s32 4294967294, %s827_s23   ;;  %s827_s23 = sphi %s872_s23, %s18_s23   ;;  %s823_s22 = sphi %s870_s22, %s1001_s22   ;;  %s819_s21 = sphi %s868_s21, %s1000_s21   ;;  %s815_s20 = sphi %s866_s20, %s999_s20   ;;  %s811_s19 = sphi %s864_s19, %s998_s19   ;;  %s807_s18 = sphi %s862_s18, %s997_s18  }
   0x5   : > { %s37_s26 = sadd.s32 1, %s823_s22  ;;  %s173_s27 = sadd.s32 1, %s815_s20 }
   0x6   : > { %p39_p0 = scmp.ge.s32.totalorder %s37_s26, 2  ;;  %p183_p1 = scmp.ne.s32.totalorder %s815_s20, %s811_s19 }
   0x7   : > { %p184_p2 = scmp.eq.s32.totalorder %s658_s24, 1  ;;  %p189_p3 = scmp.ne.s32.totalorder %s811_s19, %s807_s18 }
   0x8   : > { %s1003_s26 = smov (%p39_p0, %s37_s26), 0  ;;  %p190_p5 = scmp.eq.s32.totalorder %s659_s25, 1 }
   0x9   : > { %p902_p4 = por %p184_p2, %p183_p1  ;;  %s168_s29 = ssub.s32 %s823_s22, %s1003_s26 }
   0xa   : > { %p665_p6 = scmp.ge.s32.totalorder %s827_s23, 1  ;;  %p171_p7 = scmp.eq.s32.totalorder %s168_s29, 0 }
   0xb   : > { %p909_p8 = por %p190_p5, %p189_p3  ;;  %p249_p9 = scmp.lt.s32.totalorder %s827_s23, 3 }
   0xc   : > { %s915_s6 = scalar_select %p171_p7, %s815_s20, %s173_s27  }
   0xd   : > { %p250_p10 = pnand %p665_p6, %p249_p9 }
   0xe   : > { %p296_p11 = scmp.lt.s32.totalorder (!%p250_p10), %s819_s21, 1  ;;  %v829_v0 = vmov (!%p250_p10), 0   ;;  %v336_v1 = vld [vmem:[%s992_s3] sm:$0xff] (!%p250_p10)  ;;  %v337_v2 = vld [vmem:[%s992_s3 + $0x8] sm:$0xff] (!%p250_p10)  ;;  %vm357_vm0 = vcmask (!%p250_p10), 1041408   ;;  %vm353_vm1 = vcmask (!%p250_p10), 31744   ;;  %v510_v61 = vlaneseq (!%p250_p10) }
   0xf   : > { %253 = sbr.rel (%p250_p10) target bundleno = 514 (0x202), region = 40  ;;  %396 = vmatprep.mubr.bf16.mxu0 (!%p250_p10), %v829_v0  ;;  %737 = vset.pattern.permute.xlu0 (!%p250_p10), %v829_v0  ;;  %v740_v8 = vld [vmem:[%s990_s1] sm:$0xff] (!%p250_p10)   ;;  %vm447_vm2 = vcmask (!%p250_p10), 130048   ;;  %v830_v59 = vmov (!%p250_p10), 839922192   ;;  %s292_s7 = sand.u32 (!%p250_p10), 1, %s811_s19  }
  0x10   : > { %340 = vperm.xlu0 (!%p250_p10), %737, %v336_v1   ;;  %483 = vmatprep.mubr.bf16.mxu1 (!%p250_p10), %v829_v0  ;;  %v502_v9 = vld [vmem:[%s993_s4] sm:$0xf] (!%p250_p10)  ;;  %v508_v60 = vunpack.c.l.s4 (!%p250_p10), %v830_v59  ;;  %v511_v63 = vshrl.u32 (!%p250_p10), %v510_v61, 7  ;;  %s666_s8 = sshll.u32 (!%p250_p10), %s292_s7, 3 }
  0x11   : > { %738 = vset.pattern.permute.xlu1 (!%p250_p10), %v829_v0  ;;  %v444_v58 = vld [vmem:[%s991_s2] sm:$0x3] (!%p250_p10)  ;;  %s294_s10 = scalar_lea.vmem (!%p250_p10), [#allocation3], %s666_s8 }
  0x12   : > { %505 = vperm.xlu1 (!%p250_p10), %738, %v502_v9   ;;  %v509_v62 = vunpack.c.0.s8 (!%p250_p10), %v508_v60  ;;  %s534_s11 = sshll.u32 (!%p250_p10), %s294_s10, 4  ;;  %s944_s11 = int_to_ptr.vmem [resolvable:$true] %s534_s11 }
  0x13   : > { %s749_s16 = scalar_lea.vmem (!%p250_p10), %s944_s11, 128 }
  0x14   : > { %345 = vperm.xlu0 (!%p250_p10), %737, %v337_v2   ;;  %v512_v0 = vsub.s32 (!%p250_p10), %v509_v62, %v511_v63  ;;  %p750_p12 = scmp.ne.s32.totalorder (!%p250_p10), %s944_s11, %s749_s16 }
  0x16   : > { %s297_s9 = scalar_select %p296_p11, %s819_s21, 1 }
  0x17   : > { %p751_p13 = pnand %p750_p12, %p902_p4 }
  0x18   : > { %s678_s12 = sshll.u32 %s297_s9, 3  ;;  %s679_s9 = sshll.u32 %s819_s21, 7 }
  0x19   : > { %s303_s15 = scalar_lea.vmem %s989_s0, %s678_s12  ;;  %s942_s14 = scalar_lea.hbm %s994_s5, %s679_s9 }
  0x1a   : > { %v328_v3 = vld [vmem:[%s303_s15] sm:$0xff]  ;;  %s518_s15 = scalar_lea.sflag [#allocation4], %s292_s7  ;;  %p752_p0 = pneg %p751_p13 }
  0x1b   : > { %v330_v4 = vcombine.high %v328_v3, %v328_v3  ;;  %v332_v5 = vpack.c.bf16 %v328_v3, %v328_v3  ;;  %s831_s21 = smov [#allocation3]  }
  0x1c   : > { %s753_s17 = sshll.u32 %s831_s21, 4  ;;  %s754_s17 = int_to_ptr.vmem [resolvable:$false] %s753_s17 }
  0x1d   : > { %v333_v6 = vpack.c.bf16 %v330_v4, %v330_v4  ;;  %v359_v7 = vsel %vm357_vm0, %v332_v5, 0  ;;  %s755_s24 = scalar_lea.vmem %s754_s17, 256  ;;  %p756_p1 = scmp.lt.s32.totalorder %s944_s11, %s754_s17 }
  0x1e   : > { %p757_p2 = scmp.lt.s32.totalorder %s755_s24, %s749_s16 }
  0x1f   : > { %670 = vmatprep.subr.msk.bf16.mxu0 %vm357_vm0, %v333_v6 }
  0x20   : > { %365 = vmatpush1.bf16.msra.mxu0 %v359_v7  ;;  %p758_p3 = por %p757_p2, %p756_p1 }
  0x22   : > { %p759_p5 = pnand %p758_p3, %p752_p0 }
  0x23   : > { %671 = vmatmul.mubr.msk.bf16.vlgmr.msra.gmra.mrb[0].mxu0 %vm353_vm1, %v740_v8 }
  0x8f   : > { %v341_v10 = vpop.permute.xlu0 %340 }
  0x91   : > { %v506_v1 = vpop.permute.xlu1 %505 }
  0x92   : > { %v513_v3 = vrot.slane %v506_v1, %v512_v0 }
  0x93   : > { %v346_v14 = vpop.permute.xlu0 %345 }
  0xf6   : > { %v398_v11 = vpop.f32.mrb[0].mxu0 }
  0xf7   : > { %v399_v12 = vadd.f32 %v398_v11, %v341_v10  ;;  %v400_v13 = vpop.f32.mrb[1].mxu0 }
  0xf8   : > { %v401_v15 = vadd.f32 %v400_v13, %v341_v10  ;;  %v402_v16 = vpop.f32.mrb[2].mxu0 }
  0xf9   : > { %v411_v17 = vmul.f32 0.044715, %v399_v12  ;;  %v403_v18 = vadd.f32 %v402_v16, %v346_v14  ;;  %v404_v19 = vpop.f32.mrb[3].mxu0  ;;  %v407_v46 = vmul.f32 0.5, %v399_v12 }
  0xfa   : > { %v412_v20 = vmul.f32 0.044715, %v401_v15  ;;  %v405_v21 = vadd.f32 %v404_v19, %v346_v14  ;;  %v408_v49 = vmul.f32 0.5, %v401_v15 }
  0xfb   : > { %v415_v22 = vmul.f32 %v411_v17, %v399_v12  ;;  %v413_v23 = vmul.f32 0.044715, %v403_v18  ;;  %v409_v47 = vmul.f32 0.5, %v403_v18 }
  0xfc   : > { %v414_v24 = vmul.f32 0.044715, %v405_v21  ;;  %v416_v25 = vmul.f32 %v412_v20, %v401_v15  ;;  %v410_v50 = vmul.f32 0.5, %v405_v21 }
  0xfd   : > { %v417_v26 = vmul.f32 %v413_v23, %v403_v18  ;;  %v419_v27 = vmul.f32 %v415_v22, %v399_v12 }
  0xfe   : > { %v418_v28 = vmul.f32 %v414_v24, %v405_v21  ;;  %v420_v29 = vmul.f32 %v416_v25, %v401_v15 }
  0xff   : > { %v421_v30 = vmul.f32 %v417_v26, %v403_v18  ;;  %v423_v31 = vadd.f32 %v419_v27, %v399_v12 }
 0x100   : > { %v422_v32 = vmul.f32 %v418_v28, %v405_v21  ;;  %v424_v33 = vadd.f32 %v420_v29, %v401_v15 }
 0x101   : > { %v425_v34 = vadd.f32 %v421_v30, %v403_v18  ;;  %v427_v35 = vmul.f32 0.7978846, %v423_v31 }
 0x102   : > { %v426_v36 = vadd.f32 %v422_v32, %v405_v21  ;;  %v428_v37 = vmul.f32 0.7978846, %v424_v33 }
 0x103   : > { %v429_v38 = vmul.f32 0.7978846, %v425_v34  ;;  %741 = vtanh.f32 %v427_v35 }
 0x104   : > { %v430_v39 = vmul.f32 0.7978846, %v426_v36  ;;  %743 = vtanh.f32 %v428_v37 }
 0x105   : > { %745 = vtanh.f32 %v429_v38 }
 0x106   : > { %747 = vtanh.f32 %v430_v39 }
 0x10d   : > { %v742_v40 = vpop.eup %741 }
 0x10e   : > { %v744_v41 = vpop.eup %743  ;;  %v435_v42 = vadd.f32 1.0, %v742_v40 }
 0x10f   : > { %v746_v43 = vpop.eup %745  ;;  %v436_v44 = vadd.f32 1.0, %v744_v41 }
 0x110   : > { %v748_v45 = vpop.eup %747  ;;  %v437_v48 = vadd.f32 1.0, %v746_v43  ;;  %v439_v52 = vmul.f32 %v435_v42, %v407_v46 }
 0x111   : > { %v438_v51 = vadd.f32 1.0, %v748_v45  ;;  %v440_v54 = vmul.f32 %v436_v44, %v408_v49 }
 0x112   : > { %v441_v53 = vmul.f32 %v437_v48, %v409_v47 }
 0x113   : > { %v442_v55 = vmul.f32 %v438_v51, %v410_v50 }
 0x114   : > { %v445_v56 = vpack.c.bf16 %v441_v53, %v439_v52 }
 0x115   : > { %v446_v57 = vpack.c.bf16 %v442_v55, %v440_v54 }
 0x117   : > { %451 = vmatprep.subr.bf16.mxu1 %v446_v57 }
 0x118   : > { %452 = vmatpush1.bf16.msra.mxu1 %v445_v56 }
 0x11b   : > { %672 = vmatmul.mubr.msk.bf16.vlgmr.msra.gmra.mrb[0].mxu1 %vm447_vm2, %v444_v58 }
 0x1ee   : > { %v485_v2 = vpop.f32.mrb[0].mxu1 }
 0x1ef   : > { %v487_v4 = vpop.f32.mrb[1].mxu1 }
 0x1f0   : > { %v494_v5 = vcombine.low %v485_v2, %v487_v4  ;;  %v489_v6 = vpop.f32.mrb[2].mxu1 }
 0x1f1   : > { %v490_v7 = vpop.f32.mrb[3].mxu1 }
 0x1f2   : > { %v515_v8 = vadd.f32 %v513_v3, %v494_v5 }
 0x1f4   : > { %516 = vst [vmem:[%s294_s10] sm:$0xff] %v515_v8 }
 0x1f5   : > { %762 = shalt.err (!%p759_p5)
}
 0x1f6   : > { %s763_s25 = scalar_lea.hbm %s942_s14, 128  ;;  %s767_s7 = scalar_lea.hbm %s994_s5, 256 }
 0x1f7   : > { %p764_p6 = scmp.ne.s32.totalorder %s942_s14, %s763_s25  ;;  %p768_p10 = scmp.lt.u32.totalorder %s942_s14, %s994_s5 }
 0x1f8   : > { %p769_p11 = scmp.lt.u32.totalorder %s767_s7, %s763_s25  ;;  %p771_p13 = scmp.lt.u32.totalorder %s763_s25, %s942_s14 }
 0x1f9   : > { %p765_p7 = pnand %p764_p6, %p902_p4 }
 0x1fa   : > { %p770_p12 = por %p769_p11, %p768_p10 }
 0x1fb   : > { %p766_p9 = pneg %p765_p7 }
 0x1fc   : > { %p772_p0 = por %p771_p13, %p770_p12 }
 0x1fe   : > { %p773_p1 = pnand %p772_p0, %p766_p9 }
 0x200   : > { %776 = shalt.err (!%p773_p1)
}
 0x201   : > { %680 = dma.vmem_to_hbm [thread:$0]  (%p902_p4), %s944_s11, 128, %s942_s14, %s518_s15  }
 0x202 PF: > { %p686_p2 = scmp.ge.s32.totalorder %s827_s23, 2  ;;  %s546_s10 = sand.u32 1, %s807_s18  }
 0x203   : > { %s547_s12 = scalar_lea.sflag [#allocation4], %s546_s10 }
 0x204   : > { %p683_p3 = pnand %p686_p2, %p909_p8 }
 0x206   : > { %802 = dma.done.wait (!%p683_p3), %s547_s12, 128  }
 0x207   : > { %804 = vsyncadd (!%p683_p3), %s547_s12, 4294967168  ;;  %s18_s23 = sadd.s32 1, %s827_s23   ;;  %s997_s18 = smov %s811_s19 }
 0x208   : > { %p15_p5 = scmp.ge.s32.totalorder %s18_s23, 4   ;;  %s998_s19 = smov %s815_s20 }
 0x209   : > { %s999_s20 = smov %s915_s6  ;;  %s1000_s21 = smov %s823_s22 }
 0x20a   : > { %s1001_s22 = smov %s1003_s26  ;;  %17 = sbr.rel (!%p15_p5) target bundleno = 4 (0x4), region = 92 }
 0x211   :  { %552 = vsyncpa [#allocation4], 1 }
 0x212   :  { %554 = vsyncpa [#allocation4 + $0x1], 1 }

</bundles_post_ra>
